<compile_context>
chip_gen: v7x
topology: tpu7x:2x2x1
jax: 0.10.0
libtpu: 0.0.40
codegen_flags: <defaults>
</compile_context>

<pallas_src>
import functools

import numpy as np

import jax
import jax.numpy as jnp
from jax.experimental import pallas as pl
from jax.experimental.pallas import tpu as pltpu


def _round_up(x: int, m: int) -> int:
    return ((x + m - 1) // m) * m


def encoder_kernel(seed_ref, x_ref, w_ref, b_ref, o_ref, *,
                   dropout_rate, training, activation):
    """Dropout -> (x @ W^T + b) -> optional activation for one (tm, tn) tile."""
    x = x_ref[...]                                   # (tm, H), native dtype

    if training and dropout_rate > 0.0:
        # Inverted dropout with the TPU hardware PRNG. Seed depends only on the
        # M-tile index -> identical mask for a given row across all N tiles.
        pltpu.prng_seed(seed_ref[0] + pl.program_id(0))
        bits = pltpu.bitcast(pltpu.prng_random_bits(x.shape), jnp.uint32)
        thresh = np.uint32(min(int(round(dropout_rate * 2.0 ** 32)), 2 ** 32 - 1))
        keep = bits >= thresh                        # P(keep) = 1 - p
        scale = jnp.asarray(1.0 / (1.0 - dropout_rate), dtype=x.dtype)
        x = jnp.where(keep, x * scale, jnp.zeros_like(x))

    # MXU matmul in the native dtype with f32 accumulation:
    #   (tm, H) . (tn, H)^T -> (tm, tn); weight stays in PyTorch (P, H) layout.
    y = jax.lax.dot_general(
        x, w_ref[...],
        dimension_numbers=(((1,), (1,)), ((), ())),
        preferred_element_type=jnp.float32)
    y = y + b_ref[...].astype(jnp.float32)

    if activation == "relu":
        y = jnp.maximum(y, 0.0)
    elif activation == "tanh":
        y = jnp.tanh(y)
    elif activation == "gelu":
        y = jax.nn.gelu(y)
    # activation is None -> identity (module default)

    o_ref[...] = y.astype(o_ref.dtype)


def encoder_forward(x, weight, bias=None, *, dropout_rate=0.1, training=False,
                    activation=None, seed=0, tm=512, tn=512):
    """Pallas-backed Encoder.forward.

    Args:
      x:      (B, S, H) input activations.
      weight: (P, H) projection weight (PyTorch nn.Linear layout, NOT transposed).
      bias:   (P,) projection bias or None.
    Returns:
      (B, S, P) projected activations, same dtype as x.
    """
    B, S, H = x.shape
    P = weight.shape[0]
    M = B * S
    out_dtype = x.dtype

    if bias is None:
        bias = jnp.zeros((P,), dtype=weight.dtype)

    # ---- tile sizes & padding (lane-dense output, sublane-aligned rows) ----
    tm = min(int(tm), _round_up(M, 8))
    tn = min(int(tn), _round_up(P, 128))
    M_pad = _round_up(M, tm)
    P_pad = _round_up(P, tn)

    x2 = x.reshape(M, H)
    if M_pad != M:
        x2 = jnp.pad(x2, ((0, M_pad - M), (0, 0)))
    w = weight
    b = bias
    if P_pad != P:
        w = jnp.pad(w, ((0, P_pad - P), (0, 0)))
        b = jnp.pad(b, ((0, P_pad - P),))
    b2 = b.reshape(1, P_pad)

    seed_arr = jnp.array([seed], dtype=jnp.int32)

    kernel = functools.partial(
        encoder_kernel,
        dropout_rate=float(dropout_rate),
        training=bool(training),
        activation=activation,
    )

    grid = (M_pad // tm, P_pad // tn)

    x_isz = jnp.dtype(x.dtype).itemsize
    w_isz = jnp.dtype(w.dtype).itemsize
    o_isz = jnp.dtype(out_dtype).itemsize
    tile_bytes = (tm * H * x_isz + tn * H * w_isz + tn * w_isz + tm * tn * o_isz)
    # double-buffered working set + headroom, floored at 16 MiB, capped at 64 MiB
    vmem_limit = int(min(64 * 2 ** 20,
                         max(16 * 2 ** 20, 2 * tile_bytes + 4 * 2 ** 20)))

    cost = pl.CostEstimate(
        flops=2 * M_pad * H * P_pad,
        bytes_accessed=(M_pad * H * x_isz + P_pad * H * w_isz
                        + P_pad * w_isz + M_pad * P_pad * o_isz),
        transcendentals=(M_pad * P_pad if activation in ("tanh", "gelu") else 0),
    )

    out2 = pl.pallas_call(
        kernel,
        out_shape=jax.ShapeDtypeStruct((M_pad, P_pad), out_dtype),
        grid_spec=pltpu.PrefetchScalarGridSpec(
            num_scalar_prefetch=1,                       # dropout seed in SMEM
            grid=grid,
            in_specs=[
                pl.BlockSpec((tm, H), lambda i, j, seed: (i, 0)),   # x tile
                pl.BlockSpec((tn, H), lambda i, j, seed: (j, 0)),   # W tile (P,H)
                pl.BlockSpec((1, tn), lambda i, j, seed: (0, j)),   # bias tile
            ],
            out_specs=pl.BlockSpec((tm, tn), lambda i, j, seed: (i, j)),
        ),
        compiler_params=pltpu.CompilerParams(
            dimension_semantics=("parallel", "parallel"),
            vmem_limit_bytes=vmem_limit),
        cost_estimate=cost,
    )(seed_arr, x2, w, b2)

    return out2[:M, :P].reshape(B, S, P)


if __name__ == "__main__":
    # Small, deterministic example shapes consistent with the module:
    # batch=2, seq=8, transformer_hidden_size=32, projection_size=64
    B, S, H, P = 2, 8, 32, 64

    key = jax.random.PRNGKey(0)
    kx, kw, kb = jax.random.split(key, 3)

    x = jax.random.normal(kx, (B, S, H), dtype=jnp.float32)

    # nn.Linear default init: U(-1/sqrt(in_features), 1/sqrt(in_features))
    bound = 1.0 / (H ** 0.5)
    weight = jax.random.uniform(kw, (P, H), minval=-bound, maxval=bound,
                                dtype=jnp.float32)
    bias = jax.random.uniform(kb, (P,), minval=-bound, maxval=bound,
                              dtype=jnp.float32)

    # Eval-mode forward (dropout = identity, activation_layer = None),
    # matching the PyTorch module defaults at inference time.
    out = encoder_forward(x, weight, bias, dropout_rate=0.1,
                          training=False, activation=None)
    out = jax.block_until_ready(out)

    ref = (x.reshape(-1, H) @ weight.T + bias).reshape(B, S, P)
    assert out.shape == (B, S, P)
    assert jnp.allclose(out, ref, atol=1e-4, rtol=1e-4), "mismatch vs reference"

    # Also exercise an explicit activation_layer (ReLU), still eval mode.
    out_relu = encoder_forward(x, weight, bias, dropout_rate=0.1,
                               training=False, activation="relu")
    out_relu = jax.block_until_ready(out_relu)
    ref_relu = jnp.maximum(ref, 0.0)
    assert jnp.allclose(out_relu, ref_relu, atol=1e-4, rtol=1e-4), \
        "mismatch vs relu reference"

    # TODO(synk): training-mode dropout uses the TPU hardware PRNG and cannot
    # bit-match torch.nn.Dropout's RNG stream; semantics (Bernoulli keep mask
    # + 1/(1-p) scaling, one mask per input row) are reproduced.
    print("KERNEL_OK")
</pallas_src>

<mosaic_0001>
module attributes {stable_mosaic.version = 11 : i64} {
  func.func @encoder_kernel(%arg0: i32, %arg1: i32, %arg2: memref<1xi32, #tpu.memory_space<smem>>, %arg3: memref<16x32xf32, #tpu.memory_space<vmem>>, %arg4: memref<128x32xf32, #tpu.memory_space<vmem>>, %arg5: memref<1x128xf32, #tpu.memory_space<vmem>>, %arg6: memref<16x128xf32, #tpu.memory_space<vmem>>) attributes {dimension_semantics = [#tpu.dimension_semantics<parallel>, #tpu.dimension_semantics<parallel>], iteration_bounds = array<i64: 1, 1>, scalar_prefetch = 1 : i64, scratch_operands = 0 : i64, tpu.core_type = #tpu.core_type<tc>, window_params = [{transform_indices = @transform_0, window_bounds = array<i64: 16, 32>}, {transform_indices = @transform_1, window_bounds = array<i64: 128, 32>}, {transform_indices = @transform_2, window_bounds = array<i64: 1, 128>}, {transform_indices = @transform_3, window_bounds = array<i64: 16, 128>}]} {
    %c0 = arith.constant 0 : index
    %c0_0 = arith.constant 0 : index
    %0 = vector.load %arg3[%c0, %c0_0] : memref<16x32xf32, #tpu.memory_space<vmem>>, vector<16x32xf32>
    %c0_1 = arith.constant 0 : index
    %c0_2 = arith.constant 0 : index
    %1 = vector.load %arg4[%c0_1, %c0_2] : memref<128x32xf32, #tpu.memory_space<vmem>>, vector<128x32xf32>
    %cst = arith.constant dense<0.000000e+00> : vector<16x128xf32>
    %2 = tpu.matmul %0, %1, %cst {dimension_numbers = #tpu.dot_dimension_numbers<[1], [1], [0], [0], [0, 0, 1, 0], [], []>} : vector<16x32xf32>, vector<128x32xf32>, vector<16x128xf32> -> vector<16x128xf32>
    %c0_3 = arith.constant 0 : index
    %c0_4 = arith.constant 0 : index
    %3 = vector.load %arg5[%c0_3, %c0_4] : memref<1x128xf32, #tpu.memory_space<vmem>>, vector<1x128xf32>
    %4 = vector.broadcast %3 : vector<1x128xf32> to vector<16x128xf32>
    %5 = arith.addf %2, %4 : vector<16x128xf32>
    %c0_5 = arith.constant 0 : index
    %c0_6 = arith.constant 0 : index
    %6 = vector.load %arg6[%c0_5, %c0_6] : memref<16x128xf32, #tpu.memory_space<vmem>>, vector<16x128xf32>
    tpu.vector_store %arg6[%c0_5, %c0_6], %5 {strides = array<i32>} : memref<16x128xf32, #tpu.memory_space<vmem>>, vector<16x128xf32>,
    return
  }
  func.func @transform_0(%arg0: i32, %arg1: i32, %arg2: memref<1xi32, #tpu.memory_space<smem>>) -> (i32, i32) {
    %c0_i32 = arith.constant 0 : i32
    %c0_i32_0 = arith.constant 0 : i32
    return %arg0, %c0_i32 : i32, i32
  }
  func.func @transform_1(%arg0: i32, %arg1: i32, %arg2: memref<1xi32, #tpu.memory_space<smem>>) -> (i32, i32) {
    %c0_i32 = arith.constant 0 : i32
    %c0_i32_0 = arith.constant 0 : i32
    return %arg1, %c0_i32 : i32, i32
  }
  func.func @transform_2(%arg0: i32, %arg1: i32, %arg2: memref<1xi32, #tpu.memory_space<smem>>) -> (i32, i32) {
    %c0_i32 = arith.constant 0 : i32
    %c0_i32_0 = arith.constant 0 : i32
    return %c0_i32, %arg1 : i32, i32
  }
  func.func @transform_3(%arg0: i32, %arg1: i32, %arg2: memref<1xi32, #tpu.memory_space<smem>>) -> (i32, i32) {
    %c0_i32 = arith.constant 0 : i32
    return %arg0, %arg1 : i32, i32
  }
}

</mosaic_0001>

<bundles_post_ra>
// kernel: tpu_custom_call.1
= control target key start
LH: loop header
LB: loop body
LE: loop exit
PB: predicated region body
PF: predicated region fallthrough
CT: control target
= control target key end

     0   :  { %vm42_vm0 = vcmask 261120   ;;  %s474_s0 = inlined_call_operand.<no memory space> [shape: s32[1], index: 0, kind: input, shape index: {}]   ;;  %s475_s1 = inlined_call_operand.vmem [shape: f32[16,32], index: 1, kind: input, shape index: {}]   ;;  %s476_s2 = inlined_call_operand.vmem [shape: f32[128,32], index: 2, kind: input, shape index: {}]   ;;  %s477_s3 = inlined_call_operand.vmem [shape: f32[1,128], index: 3, kind: input, shape index: {}]   ;;  %s478_s4 = inlined_call_operand.hbm [shape: f32[16,128], index: 4, kind: output, shape index: {}]  }
   0x1   :  { %v19_v0 = vld [vmem:[%s476_s2] sm:$0xff]  ;;  %v20_v1 = vld [vmem:[%s476_s2 + $0x8] sm:$0xff]  ;;  %v21_v2 = vld [vmem:[%s476_s2 + $0x10] sm:$0xff] }
   0x2   :  { %v262_v3 = vpack.c.bf16 %v20_v1, %v19_v0  ;;  %vm376_vm1 = vmpackc.low %vm42_vm0, %vm42_vm0  ;;  %v22_v5 = vld [vmem:[%s476_s2 + $0x18] sm:$0xff]  ;;  %v17_v7 = vld [vmem:[%s475_s1] sm:$0xff] }
   0x3   :  { %v268_v6 = vpack.c.bf16 %v22_v5, %v21_v2  ;;  %v23_v8 = vld [vmem:[%s476_s2 + $0x20] sm:$0xff]  ;;  %v24_v9 = vld [vmem:[%s476_s2 + $0x28] sm:$0xff]  ;;  %259 = vmatprep.mubr.msk.f32.mxu0 %vm42_vm0, %v17_v7 }
   0x4   :  { %264 = vmatprep.subr.msk.bf16.mxu0 %vm376_vm1, %v262_v3 }
   0x5   :  { %267 = vmatpush3.bf16.xpose.msk.msra.mxu0 %vm376_vm1, %v262_v3 }
   0x6   :  { %270 = vmatprep.subr.msk.bf16.mxu0 %vm376_vm1, %v268_v6 }
   0x7   :  { %10 = vsyncpa [#allocation5], 0  ;;  %v274_v10 = vpack.c.bf16 %v24_v9, %v23_v8  ;;  %v25_v11 = vld [vmem:[%s476_s2 + $0x30] sm:$0xff]  ;;  %v26_v12 = vld [vmem:[%s476_s2 + $0x38] sm:$0xff] }
   0x8   :  { %v280_v13 = vpack.c.bf16 %v26_v12, %v25_v11  ;;  %v27_v14 = vld [vmem:[%s476_s2 + $0x40] sm:$0xff]  ;;  %v28_v15 = vld [vmem:[%s476_s2 + $0x48] sm:$0xff]  ;;  %v29_v17 = vld [vmem:[%s476_s2 + $0x50] sm:$0xff] }
   0x9   :  { %v286_v16 = vpack.c.bf16 %v28_v15, %v27_v14  ;;  %v30_v18 = vld [vmem:[%s476_s2 + $0x58] sm:$0xff]  ;;  %v31_v20 = vld [vmem:[%s476_s2 + $0x60] sm:$0xff]  ;;  %v32_v21 = vld [vmem:[%s476_s2 + $0x68] sm:$0xff] }
   0xa   :  { %v292_v19 = vpack.c.bf16 %v30_v18, %v29_v17  ;;  %v298_v22 = vpack.c.bf16 %v32_v21, %v31_v20  ;;  %v33_v23 = vld [vmem:[%s476_s2 + $0x70] sm:$0xff]  ;;  %v34_v24 = vld [vmem:[%s476_s2 + $0x78] sm:$0xff]  ;;  %v18_v26 = vld [vmem:[%s475_s1 + $0x8] sm:$0xff]  ;;  %s337_s2 = smov [#allocation4]  }
   0xb   :  { %v304_v25 = vpack.c.bf16 %v34_v24, %v33_v23  ;;  %v190_v27 = vld [vmem:[%s477_s3] ss:$0 sm:$0xff]  ;;  %s179_s25 = sshll.u32 %s337_s2, 4  ;;  %s180_s25 = int_to_ptr.vmem [resolvable:$true] %s179_s25 }
   0xc   :  { %s313_s26 = scalar_lea.vmem %s180_s25, 256  ;;  %p318_p1 = scmp.lt.s32.totalorder %s180_s25, %s180_s25 }
   0xd   :  { %273 = vmatpush3.bf16.xpose.msk.msra.mxu0 %vm376_vm1, %v268_v6  ;;  %p314_p0 = scmp.ne.s32.totalorder %s180_s25, %s313_s26  ;;  %p319_p2 = scmp.lt.s32.totalorder %s313_s26, %s313_s26 }
   0xe   :  { %276 = vmatprep.subr.msk.bf16.mxu0 %vm376_vm1, %v274_v10 }
   0xf   :  { %p320_p3 = por %p319_p2, %p318_p1 }
  0x11   :  { %p321_p4 = pnand %p320_p3, %p314_p0 }
  0x15   :  { %279 = vmatpush3.bf16.xpose.msk.msra.mxu0 %vm376_vm1, %v274_v10 }
  0x16   :  { %282 = vmatprep.subr.msk.bf16.mxu0 %vm376_vm1, %v280_v13 }
  0x1d   :  { %285 = vmatpush3.bf16.xpose.msk.msra.mxu0 %vm376_vm1, %v280_v13 }
  0x1e   :  { %288 = vmatprep.subr.msk.bf16.mxu0 %vm376_vm1, %v286_v16 }
  0x25   :  { %291 = vmatpush3.bf16.xpose.msk.msra.mxu0 %vm376_vm1, %v286_v16 }
  0x26   :  { %294 = vmatprep.subr.msk.bf16.mxu0 %vm376_vm1, %v292_v19 }
  0x2d   :  { %297 = vmatpush3.bf16.xpose.msk.msra.mxu0 %vm376_vm1, %v292_v19 }
  0x2e   :  { %300 = vmatprep.subr.msk.bf16.mxu0 %vm376_vm1, %v298_v22 }
  0x35   :  { %303 = vmatpush3.bf16.xpose.msk.msra.mxu0 %vm376_vm1, %v298_v22 }
  0x36   :  { %306 = vmatprep.subr.msk.bf16.mxu0 %vm376_vm1, %v304_v25 }
  0x3d   :  { %309 = vmatpush3.bf16.xpose.msk.msra.mxu0 %vm376_vm1, %v304_v25 }
  0x44   :  { %260 = vmatmul.mubr.msk.f32.vlgmr.msra.gmra.mrb[0].mxu0 %vm42_vm0, %v18_v26 }
 0x117   :  { %v261_v28 = vpop.f32.mrb[0].mxu0 }
 0x118   :  { %v169_v29 = vadd.f32 %v261_v28, %v190_v27  ;;  %v163_v30 = vpop.f32.mrb[1].mxu0 }
 0x119   :  { %v164_v31 = vadd.f32 %v190_v27, %v163_v30 }
 0x11a   :  { %173 = vst [vmem:[#allocation4 + $0x8] sm:$0xff] %v169_v29 }
 0x11b   :  { %172 = vst [vmem:[#allocation4] sm:$0xff] %v164_v31 }
 0x11c   :  { %324 = shalt.err (!%p321_p4)
}
 0x11d   :  { %s325_s3 = scalar_lea.hbm %s478_s4, 256 }
 0x11e   :  { %p326_p5 = scmp.ne.s32.totalorder %s478_s4, %s325_s3  ;;  %p329_p6 = scmp.lt.u32.totalorder %s325_s3, %s478_s4 }
 0x120   :  { %p331_p7 = pnand %p329_p6, %p326_p5 }
 0x122   :  { %334 = shalt.err (!%p331_p7)
}
 0x123   :  { %s338_s6 = smov 128   ;;  %s339_s7 = smov 8  }
 0x124   :  { %185 = dma.vmem_to_hbm [thread:$0]  %s180_s25, 256, %s478_s4, [#allocation5], %s338_s6, %s338_s6, %s339_s7  }
 0x125   :  { %335 = dma.done.wait [#allocation5], 256  }
 0x126   :  { %336 = vsyncadd [#allocation5], 4294967040 }
 0x127   :  { %189 = vsyncpa [#allocation5], 1 }

</bundles_post_ra>
